<compile_context>
chip_gen: v7x
topology: tpu7x:2x2x1
jax: 0.10.0
libtpu: 0.0.40
codegen_flags: <defaults>
</compile_context>

<pallas_src>
import jax
import jax.numpy as jnp
from jax.experimental import pallas as pl
from jax.experimental.pallas import tpu as pltpu

HID = 128       # lane-dense hidden width (layer-1's 64 units zero-padded to 128)
OUT_PAD = 128   # lane-dense padded output width (real out_dim sliced in wrapper)


def _mlp_kernel(x_ref, w1_ref, w2_ref, w3_ref, b_ref, o_ref):
    """Fused 3-layer MLP on one (TB, D_in) row tile.

    Weights (w1: (D_in,128), w2: (128,128), w3: (128,128)) and the packed
    bias matrix b: (3,128) are VMEM-resident across all grid steps; only the
    activation tile and the (TB,128) output tile move per step.
    """
    x = x_ref[...]                     # (TB, D_in), f32
    b = b_ref[...]                     # (3, 128),   f32 packed biases
    wt = w1_ref.dtype                  # weight compute dtype (f32 or bf16)

    # Layer 1: Linear(D_in, 64) + ReLU   (zero-padded to 128 lanes)
    h1 = jnp.dot(x.astype(wt), w1_ref[...], preferred_element_type=jnp.float32)
    h1 = jnp.maximum(h1 + b[0:1, :], 0.0)          # (TB, 128)

    # Layer 2: Linear(64, 128) + ReLU
    h2 = jnp.dot(h1.astype(wt), w2_ref[...], preferred_element_type=jnp.float32)
    h2 = jnp.maximum(h2 + b[1:2, :], 0.0)          # (TB, 128)

    # Layer 3: Linear(128, out_dim)  (no activation; padded to 128 lanes)
    out = jnp.dot(h2.astype(wt), w3_ref[...], preferred_element_type=jnp.float32)
    o_ref[...] = (out + b[2:3, :]).astype(o_ref.dtype)


def _round_up(n, m):
    return (n + m - 1) // m * m


def _pack_params(params, weight_dtype):
    """Zero-pad weights to lane-dense 128-wide tiles and pack biases (3,128)."""
    w1, b1 = params["w1"], params["b1"]   # (D_in, 64), (1, 64)
    w2, b2 = params["w2"], params["b2"]   # (64, 128),  (1, 128)
    w3, b3 = params["w3"], params["b3"]   # (128, D_out), (1, D_out)

    d_in, h1 = w1.shape
    h2 = w2.shape[1]
    d_out = w3.shape[1]
    assert h2 <= HID and d_out <= OUT_PAD and h1 <= HID

    b1 = jnp.reshape(b1, (-1,))
    b2 = jnp.reshape(b2, (-1,))
    b3 = jnp.reshape(b3, (-1,))

    w1p = jnp.zeros((d_in, HID), jnp.float32).at[:, :h1].set(w1)
    w2p = jnp.zeros((HID, HID), jnp.float32).at[:h1, :h2].set(w2)
    w3p = jnp.zeros((HID, OUT_PAD), jnp.float32).at[:h2, :d_out].set(w3)
    bp = (jnp.zeros((3, OUT_PAD), jnp.float32)
          .at[0, :h1].set(b1)
          .at[1, :h2].set(b2)
          .at[2, :d_out].set(b3))

    return (w1p.astype(weight_dtype),
            w2p.astype(weight_dtype),
            w3p.astype(weight_dtype),
            bp)  # biases stay f32 (elementwise path is f32 on all gens)


def net_forward(x, params, *, weight_dtype=jnp.float32, block_batch=256):
    """Pallas wrapper: fused MLP with a streamed batch grid.

    x:      (batch, input_dim) float32
    params: dict with w1 (D_in,64), b1 (1,64), w2 (64,128), b2 (1,128),
            w3 (128,D_out), b3 (1,D_out)
    weight_dtype: jnp.float32 (exact) or jnp.bfloat16 (MXU-native on v6e/v7x;
                  accumulation stays f32).
    """
    w1p, w2p, w3p, bp = _pack_params(params, weight_dtype)

    batch, d_in = x.shape
    d_out = params["w3"].shape[1]

    # Sublane-aligned batch tile (multiple of 8), capped at block_batch.
    tb = min(block_batch, _round_up(batch, 8))
    batch_p = _round_up(batch, tb)
    if batch_p != batch:
        x = jnp.pad(x, ((0, batch_p - batch), (0, 0)))

    grid = (batch_p // tb,)

    out = pl.pallas_call(
        _mlp_kernel,
        out_shape=jax.ShapeDtypeStruct((batch_p, OUT_PAD), jnp.float32),
        grid=grid,
        in_specs=[
            # Streamed activation tile (double-buffered by the pipeline).
            pl.BlockSpec((tb, d_in), lambda i: (i, 0)),
            # Weights / packed biases: constant block index -> VMEM-resident.
            pl.BlockSpec(w1p.shape, lambda i: (0, 0)),
            pl.BlockSpec(w2p.shape, lambda i: (0, 0)),
            pl.BlockSpec(w3p.shape, lambda i: (0, 0)),
            pl.BlockSpec(bp.shape, lambda i: (0, 0)),
        ],
        # Lane-dense (TB, 128) output tile -> unmasked stores.
        out_specs=pl.BlockSpec((tb, OUT_PAD), lambda i: (i, 0)),
        compiler_params=pltpu.CompilerParams(
            dimension_semantics=("parallel",)),
    )(x, w1p, w2p, w3p, bp)

    return out[:batch, :d_out]


def init_params(key, input_dim, output_dim):
    """Deterministic init mimicking PyTorch's default nn.Linear init
    (uniform in [-1/sqrt(fan_in), 1/sqrt(fan_in)])."""
    def linear(key, fan_in, fan_out):
        kw, kb = jax.random.split(key)
        bound = 1.0 / jnp.sqrt(fan_in)
        w = jax.random.uniform(kw, (fan_in, fan_out), jnp.float32, -bound, bound)
        b = jax.random.uniform(kb, (1, fan_out), jnp.float32, -bound, bound)
        return w, b

    k1, k2, k3 = jax.random.split(key, 3)
    w1, b1 = linear(k1, input_dim, 64)
    w2, b2 = linear(k2, 64, 128)
    w3, b3 = linear(k3, 128, output_dim)
    return {"w1": w1, "b1": b1, "w2": w2, "b2": b2, "w3": w3, "b3": b3}


def net_forward_ref(x, p):
    """Pure-JAX reference for correctness checking."""
    h1 = jnp.maximum(x @ p["w1"] + p["b1"], 0.0)
    h2 = jnp.maximum(h1 @ p["w2"] + p["b2"], 0.0)
    return h2 @ p["w3"] + p["b3"]


if __name__ == "__main__":
    # CartPole-v1 shapes: state dim = 4, action dim = 2.
    input_dim, output_dim = 4, 2

    key = jax.random.PRNGKey(0)
    k_params, k_x1, k_x2 = jax.random.split(key, 3)
    params = init_params(k_params, input_dim, output_dim)

    # Small aligned batch (f32 path, exact).
    x8 = jax.random.normal(k_x1, (8, input_dim), dtype=jnp.float32)
    out8 = jax.block_until_ready(net_forward(x8, params))
    ref8 = net_forward_ref(x8, params)
    assert out8.shape == (8, output_dim), out8.shape
    assert jnp.allclose(out8, ref8, atol=1e-5, rtol=1e-5), \
        f"max abs err = {jnp.max(jnp.abs(out8 - ref8))}"

    # Unaligned batch (exercises batch padding + slicing), f32 path.
    x37 = jax.random.normal(k_x2, (37, input_dim), dtype=jnp.float32)
    out37 = jax.block_until_ready(net_forward(x37, params))
    ref37 = net_forward_ref(x37, params)
    assert out37.shape == (37, output_dim), out37.shape
    assert jnp.allclose(out37, ref37, atol=1e-5, rtol=1e-5), \
        f"max abs err = {jnp.max(jnp.abs(out37 - ref37))}"

    # bf16 weight path (v6e/v7x-friendly), f32 accumulation; loose tolerance.
    out_bf16 = jax.block_until_ready(
        net_forward(x37, params, weight_dtype=jnp.bfloat16))
    assert out_bf16.shape == (37, output_dim), out_bf16.shape
    assert jnp.allclose(out_bf16, ref37, atol=2e-2, rtol=2e-2), \
        f"bf16 max abs err = {jnp.max(jnp.abs(out_bf16 - ref37))}"

    print("KERNEL_OK")
</pallas_src>

<mosaic_0001>
module attributes {stable_mosaic.version = 11 : i64} {
  func.func @_mlp_kernel(%arg0: i32, %arg1: memref<8x4xf32, #tpu.memory_space<vmem>>, %arg2: memref<4x128xf32, #tpu.memory_space<vmem>>, %arg3: memref<128x128xf32, #tpu.memory_space<vmem>>, %arg4: memref<128x128xf32, #tpu.memory_space<vmem>>, %arg5: memref<3x128xf32, #tpu.memory_space<vmem>>, %arg6: memref<8x128xf32, #tpu.memory_space<vmem>>) attributes {dimension_semantics = [#tpu.dimension_semantics<parallel>], iteration_bounds = array<i64: 1>, scalar_prefetch = 0 : i64, scratch_operands = 0 : i64, tpu.core_type = #tpu.core_type<tc>, window_params = [{transform_indices = @transform_0, window_bounds = array<i64: 8, 4>}, {pipeline_mode = #tpu.pipeline_mode<synchronous>, transform_indices = @transform_1, window_bounds = array<i64: 4, 128>}, {pipeline_mode = #tpu.pipeline_mode<synchronous>, transform_indices = @transform_2, window_bounds = array<i64: 128, 128>}, {pipeline_mode = #tpu.pipeline_mode<synchronous>, transform_indices = @transform_3, window_bounds = array<i64: 128, 128>}, {pipeline_mode = #tpu.pipeline_mode<synchronous>, transform_indices = @transform_4, window_bounds = array<i64: 3, 128>}, {transform_indices = @transform_5, window_bounds = array<i64: 8, 128>}]} {
    %c0 = arith.constant 0 : index
    %c0_0 = arith.constant 0 : index
    %0 = vector.load %arg1[%c0, %c0_0] : memref<8x4xf32, #tpu.memory_space<vmem>>, vector<8x4xf32>
    %c0_1 = arith.constant 0 : index
    %c0_2 = arith.constant 0 : index
    %1 = vector.load %arg5[%c0_1, %c0_2] : memref<3x128xf32, #tpu.memory_space<vmem>>, vector<3x128xf32>
    %c0_3 = arith.constant 0 : index
    %c0_4 = arith.constant 0 : index
    %2 = vector.load %arg2[%c0_3, %c0_4] : memref<4x128xf32, #tpu.memory_space<vmem>>, vector<4x128xf32>
    %cst = arith.constant dense<0.000000e+00> : vector<8x128xf32>
    %3 = tpu.matmul %0, %2, %cst {dimension_numbers = #tpu.dot_dimension_numbers<[1], [0], [0], [1], [0, 0, 1, 1], [], []>} : vector<8x4xf32>, vector<4x128xf32>, vector<8x128xf32> -> vector<8x128xf32>
    %4 = vector.extract_strided_slice %1 {offsets = [0, 0], sizes = [1, 128], strides = [1, 1]} : vector<3x128xf32> to vector<1x128xf32>
    %5 = vector.broadcast %4 : vector<1x128xf32> to vector<8x128xf32>
    %6 = arith.addf %3, %5 : vector<8x128xf32>
    %cst_5 = arith.constant 0.000000e+00 : f32
    %7 = vector.broadcast %cst_5 : f32 to vector<8x128xf32>
    %8 = arith.maximumf %6, %7 : vector<8x128xf32>
    %c0_6 = arith.constant 0 : index
    %c0_7 = arith.constant 0 : index
    %9 = vector.load %arg3[%c0_6, %c0_7] : memref<128x128xf32, #tpu.memory_space<vmem>>, vector<128x128xf32>
    %cst_8 = arith.constant dense<0.000000e+00> : vector<8x128xf32>
    %10 = tpu.matmul %8, %9, %cst_8 {dimension_numbers = #tpu.dot_dimension_numbers<[1], [0], [0], [1], [0, 0, 1, 1], [], []>} : vector<8x128xf32>, vector<128x128xf32>, vector<8x128xf32> -> vector<8x128xf32>
    %11 = vector.extract_strided_slice %1 {offsets = [1, 0], sizes = [1, 128], strides = [1, 1]} : vector<3x128xf32> to vector<1x128xf32>
    %12 = vector.broadcast %11 : vector<1x128xf32> to vector<8x128xf32>
    %13 = arith.addf %10, %12 : vector<8x128xf32>
    %cst_9 = arith.constant 0.000000e+00 : f32
    %14 = vector.broadcast %cst_9 : f32 to vector<8x128xf32>
    %15 = arith.maximumf %13, %14 : vector<8x128xf32>
    %c0_10 = arith.constant 0 : index
    %c0_11 = arith.constant 0 : index
    %16 = vector.load %arg4[%c0_10, %c0_11] : memref<128x128xf32, #tpu.memory_space<vmem>>, vector<128x128xf32>
    %cst_12 = arith.constant dense<0.000000e+00> : vector<8x128xf32>
    %17 = tpu.matmul %15, %16, %cst_12 {dimension_numbers = #tpu.dot_dimension_numbers<[1], [0], [0], [1], [0, 0, 1, 1], [], []>} : vector<8x128xf32>, vector<128x128xf32>, vector<8x128xf32> -> vector<8x128xf32>
    %18 = vector.extract_strided_slice %1 {offsets = [2, 0], sizes = [1, 128], strides = [1, 1]} : vector<3x128xf32> to vector<1x128xf32>
    %19 = vector.broadcast %18 : vector<1x128xf32> to vector<8x128xf32>
    %20 = arith.addf %17, %19 : vector<8x128xf32>
    %c0_13 = arith.constant 0 : index
    %c0_14 = arith.constant 0 : index
    %21 = vector.load %arg6[%c0_13, %c0_14] : memref<8x128xf32, #tpu.memory_space<vmem>>, vector<8x128xf32>
    tpu.vector_store %arg6[%c0_13, %c0_14], %20 {strides = array<i32>} : memref<8x128xf32, #tpu.memory_space<vmem>>, vector<8x128xf32>,
    return
  }
  func.func @transform_0(%arg0: i32) -> (i32, i32) {
    %c0_i32 = arith.constant 0 : i32
    %c0_i32_0 = arith.constant 0 : i32
    return %arg0, %c0_i32 : i32, i32
  }
  func.func @transform_1(%arg0: i32) -> (i32, i32) {
    %c0_i32 = arith.constant 0 : i32
    %c0_i32_0 = arith.constant 0 : i32
    %c0_i32_1 = arith.constant 0 : i32
    return %c0_i32, %c0_i32_0 : i32, i32
  }
  func.func @transform_2(%arg0: i32) -> (i32, i32) {
    %c0_i32 = arith.constant 0 : i32
    %c0_i32_0 = arith.constant 0 : i32
    %c0_i32_1 = arith.constant 0 : i32
    return %c0_i32, %c0_i32_0 : i32, i32
  }
  func.func @transform_3(%arg0: i32) -> (i32, i32) {
    %c0_i32 = arith.constant 0 : i32
    %c0_i32_0 = arith.constant 0 : i32
    %c0_i32_1 = arith.constant 0 : i32
    return %c0_i32, %c0_i32_0 : i32, i32
  }
  func.func @transform_4(%arg0: i32) -> (i32, i32) {
    %c0_i32 = arith.constant 0 : i32
    %c0_i32_0 = arith.constant 0 : i32
    %c0_i32_1 = arith.constant 0 : i32
    return %c0_i32, %c0_i32_0 : i32, i32
  }
  func.func @transform_5(%arg0: i32) -> (i32, i32) {
    %c0_i32 = arith.constant 0 : i32
    %c0_i32_0 = arith.constant 0 : i32
    return %arg0, %c0_i32 : i32, i32
  }
}

</mosaic_0001>

<bundles_post_ra>
// kernel: tpu_custom_call.1
= control target key start
LH: loop header
LB: loop body
LE: loop exit
PB: predicated region body
PF: predicated region fallthrough
CT: control target
= control target key end

     0   :  { %10 = vsyncpa [#allocation3], 0  ;;  %s676_s0 = inlined_call_operand.vmem [shape: f32[8,4], index: 0, kind: input, shape index: {}]   ;;  %s677_s1 = inlined_call_operand.vmem [shape: f32[4,128], index: 1, kind: input, shape index: {}]   ;;  %s678_s2 = inlined_call_operand.hbm [shape: f32[128,128], index: 2, kind: input, shape index: {}]   ;;  %s679_s3 = inlined_call_operand.hbm [shape: f32[128,128], index: 3, kind: input, shape index: {}]   ;;  %s680_s4 = inlined_call_operand.vmem [shape: f32[3,128], index: 4, kind: input, shape index: {}]   ;;  %s681_s5 = inlined_call_operand.hbm [shape: f32[8,128], index: 5, kind: output, shape index: {}]  }
   0x1   :  { %11 = vsyncpa [#allocation6], 0 }
   0x2   :  { %12 = vsyncpa [#allocation4], 0  ;;  %s574_s18 = smov [#allocation2]   ;;  %s502_s22 = scalar_lea.hbm %s678_s2, 2048 }
   0x3   :  { %s22_s19 = sshll.u32 %s574_s18, 4  ;;  %p503_p0 = scmp.ne.s32.totalorder %s678_s2, %s502_s22  ;;  %s23_s19 = int_to_ptr.vmem [resolvable:$true] %s22_s19 }
   0x4   :  { %p506_p1 = scmp.lt.u32.totalorder %s502_s22, %s678_s2 }
   0x6   :  { %p508_p2 = pnand %p506_p1, %p503_p0 }
   0x8   :  { %511 = shalt.err (!%p508_p2)
}
   0x9   :  { %s512_s27 = scalar_lea.vmem %s23_s19, 2048  ;;  %p517_p4 = scmp.lt.s32.totalorder %s23_s19, %s23_s19 }
   0xa   :  { %p513_p3 = scmp.ne.s32.totalorder %s23_s19, %s512_s27  ;;  %p518_p5 = scmp.lt.s32.totalorder %s512_s27, %s512_s27 }
   0xc   :  { %p519_p6 = por %p518_p5, %p517_p4 }
   0xe   :  { %p520_p7 = pnand %p519_p6, %p513_p3 }
  0x10   :  { %523 = shalt.err (!%p520_p7)
}
  0x11   :  { %s575_s28 = smov 128   ;;  %s576_s29 = smov 8  }
  0x12   :  { %28 = dma.hbm_to_vmem [thread:$0]  %s678_s2, 2048, %s23_s19, [#allocation3], %s575_s28, %s575_s28, %s576_s29  }
  0x13   :  { %s577_s7 = smov [#allocation5]   ;;  %s524_s11 = scalar_lea.hbm %s679_s3, 2048 }
  0x14   :  { %s34_s8 = sshll.u32 %s577_s7, 4  ;;  %p525_p8 = scmp.ne.s32.totalorder %s679_s3, %s524_s11  ;;  %s35_s8 = int_to_ptr.vmem [resolvable:$true] %s34_s8 }
  0x15   :  { %p528_p9 = scmp.lt.u32.totalorder %s524_s11, %s679_s3 }
  0x17   :  { %p530_p10 = pnand %p528_p9, %p525_p8 }
  0x19   :  { %533 = shalt.err (!%p530_p10)
}
  0x1a   :  { %s534_s16 = scalar_lea.vmem %s35_s8, 2048  ;;  %p539_p12 = scmp.lt.s32.totalorder %s35_s8, %s35_s8 }
  0x1b   :  { %p535_p11 = scmp.ne.s32.totalorder %s35_s8, %s534_s16  ;;  %p540_p13 = scmp.lt.s32.totalorder %s534_s16, %s534_s16 }
  0x1d   :  { %p541_p0 = por %p540_p13, %p539_p12 }
  0x1f   :  { %p542_p1 = pnand %p541_p0, %p535_p11 }
  0x21   :  { %545 = shalt.err (!%p542_p1)
}
  0x22   :  { %40 = dma.hbm_to_vmem [thread:$0]  %s679_s3, 2048, %s35_s8, [#allocation6], %s575_s28, %s575_s28, %s576_s29  }
  0x23   :  { %568 = dma.done.wait [#allocation3], 2048  }
  0x24   :  { %569 = vsyncadd [#allocation3], 4294965248 }
  0x25   :  { %570 = dma.done.wait [#allocation6], 2048  }
  0x26   :  { %571 = vsyncadd [#allocation6], 4294965248  ;;  %v578_v0 = vmov 0.0   ;;  %vm579_vm0 = vmmov 0   ;;  %v580_v1 = vmov 0.0|0.0   ;;  %vm60_vm1 = vcmask 1043456  }
  0x27   :  { %371 = vmatprep.subr.mxu0 %v578_v0  ;;  %373 = vmatprep.mubr.msk.f32.mxu0 %vm579_vm0, %v578_v0  ;;  %vm56_vm2 = vcmask 31744   ;;  %v51_v2 = vld [vmem:[%s677_s1] sm:$0xf]  ;;  %v136_v5 = vld [vmem:[#allocation2 + $0x8] sm:$0xff]  ;;  %v137_v6 = vld [vmem:[#allocation2 + $0x10] sm:$0xff]  ;;  %v52_v49 = vlaneseq }
  0x28   :  { %446 = vmatprep.subr.bf16.mxu1 %v580_v1  ;;  %408 = vmatprep.mubr.msk.f32.mxu1 %vm579_vm0, %v578_v0  ;;  %v49_v3 = vld [vmem:[%s676_s0] sm:$0xff]  ;;  %v138_v7 = vld [vmem:[#allocation2 + $0x18] sm:$0xff]  ;;  %v140_v11 = vld [vmem:[#allocation2 + $0x28] sm:$0xff] }
  0x29   :  { %v135_v4 = vld [vmem:[#allocation2] sm:$0xff]  ;;  %372 = vmatpush3.msk.msra.mxu0 %vm60_vm1, %v51_v2  ;;  %v450_v9 = vpack.c.bf16 %v138_v7, %v137_v6  ;;  %v141_v13 = vld [vmem:[#allocation2 + $0x30] sm:$0xff]  ;;  %v142_v14 = vld [vmem:[#allocation2 + $0x38] sm:$0xff]  ;;  %v53_v50 = vshrl.u32 %v52_v49, 7 }
  0x2a   :  { %374 = vmatmul.mubr.msk.f32.vlgmr.msra.gmra.mrb[0].mxu0 %vm56_vm2, %v49_v3  ;;  %v447_v8 = vpack.c.bf16 %v136_v5, %v135_v4  ;;  %470 = vmatprep.subr.bf16.mxu0 %v580_v1  ;;  %v139_v10 = vld [vmem:[#allocation2 + $0x20] sm:$0xff]  ;;  %v456_v15 = vpack.c.bf16 %v142_v14, %v141_v13  ;;  %v144_v17 = vld [vmem:[#allocation2 + $0x48] sm:$0xff]  ;;  %v145_v19 = vld [vmem:[#allocation2 + $0x50] sm:$0xff] }
  0x2b   :  { %443 = vmatprep.mubr.msk.f32.mxu0 %vm579_vm0, %v578_v0  ;;  %v453_v12 = vpack.c.bf16 %v140_v11, %v139_v10  ;;  %v143_v16 = vld [vmem:[#allocation2 + $0x40] sm:$0xff]  ;;  %v146_v20 = vld [vmem:[#allocation2 + $0x58] sm:$0xff]  ;;  %v148_v23 = vld [vmem:[#allocation2 + $0x68] sm:$0xff]  ;;  %v54_v51 = vsub.s32 0, %v53_v50  ;;  %v153_v61 = vsub.s32 1, %v53_v50  ;;  %v244_v3 = vsub.s32 2, %v53_v50 }
  0x2c   :  { %448 = vmatpush3.bf16.msra.mxu1 %v447_v8  ;;  %v459_v18 = vpack.c.bf16 %v144_v17, %v143_v16  ;;  %v462_v21 = vpack.c.bf16 %v146_v20, %v145_v19  ;;  %v147_v22 = vld [vmem:[#allocation2 + $0x60] sm:$0xff]  ;;  %v149_v25 = vld [vmem:[#allocation2 + $0x70] sm:$0xff]  ;;  %v150_v26 = vld [vmem:[#allocation2 + $0x78] sm:$0xff] }
  0x2d   :  { %449 = vmatprep.subr.bf16.mxu1 %v580_v1  ;;  %v465_v24 = vpack.c.bf16 %v148_v23, %v147_v22  ;;  %v468_v27 = vpack.c.bf16 %v150_v26, %v149_v25  ;;  %v226_v28 = vld [vmem:[#allocation5] sm:$0xff]  ;;  %v227_v29 = vld [vmem:[#allocation5 + $0x8] sm:$0xff]  ;;  %v228_v30 = vld [vmem:[#allocation5 + $0x10] sm:$0xff] }
  0x2e   :  { %v471_v31 = vpack.c.bf16 %v227_v29, %v226_v28  ;;  %v229_v32 = vld [vmem:[#allocation5 + $0x18] sm:$0xff]  ;;  %v230_v34 = vld [vmem:[#allocation5 + $0x20] sm:$0xff]  ;;  %v231_v35 = vld [vmem:[#allocation5 + $0x28] sm:$0xff] }
  0x2f   :  { %v474_v33 = vpack.c.bf16 %v229_v32, %v228_v30  ;;  %v477_v36 = vpack.c.bf16 %v231_v35, %v230_v34  ;;  %v232_v37 = vld [vmem:[#allocation5 + $0x30] sm:$0xff]  ;;  %v233_v38 = vld [vmem:[#allocation5 + $0x38] sm:$0xff]  ;;  %v234_v40 = vld [vmem:[#allocation5 + $0x40] sm:$0xff] }
  0x30   :  { %451 = vmatpush3.bf16.msra.mxu1 %v450_v9  ;;  %472 = vmatpush3.bf16.msra.mxu0 %v471_v31  ;;  %v480_v39 = vpack.c.bf16 %v233_v38, %v232_v37  ;;  %v235_v41 = vld [vmem:[#allocation5 + $0x48] sm:$0xff]  ;;  %v236_v43 = vld [vmem:[#allocation5 + $0x50] sm:$0xff]  ;;  %v237_v44 = vld [vmem:[#allocation5 + $0x58] sm:$0xff] }
  0x31   :  { %452 = vmatprep.subr.bf16.mxu1 %v580_v1  ;;  %473 = vmatprep.subr.bf16.mxu0 %v580_v1  ;;  %v483_v42 = vpack.c.bf16 %v235_v41, %v234_v40  ;;  %v486_v45 = vpack.c.bf16 %v237_v44, %v236_v43  ;;  %v238_v46 = vld [vmem:[#allocation5 + $0x60] sm:$0xff]  ;;  %v239_v47 = vld [vmem:[#allocation5 + $0x68] sm:$0xff]  ;;  %v240_v58 = vld [vmem:[#allocation5 + $0x70] sm:$0xff] }
  0x32   :  { %v489_v48 = vpack.c.bf16 %v239_v47, %v238_v46  ;;  %v50_v52 = vld [vmem:[%s680_s4] sm:$0x7]  ;;  %v241_v59 = vld [vmem:[#allocation5 + $0x78] sm:$0xff]  ;;  %s581_s4 = smov [#allocation7]  }
  0x33   :  { %v55_v53 = vrot.slane %v50_v52, %v54_v51  ;;  %v492_v60 = vpack.c.bf16 %v241_v59, %v240_v58  ;;  %v154_v62 = vrot.slane %v50_v52, %v153_v61  ;;  %v245_v4 = vrot.slane %v50_v52, %v244_v3  ;;  %s323_s21 = sshll.u32 %s581_s4, 4  ;;  %s324_s21 = int_to_ptr.vmem [resolvable:$true] %s323_s21 }
  0x34   :  { %454 = vmatpush3.bf16.msra.mxu1 %v453_v12  ;;  %475 = vmatpush3.bf16.msra.mxu0 %v474_v33  ;;  %s546_s22 = scalar_lea.vmem %s324_s21, 128  ;;  %p551_p3 = scmp.lt.s32.totalorder %s324_s21, %s324_s21 }
  0x35   :  { %455 = vmatprep.subr.bf16.mxu1 %v580_v1  ;;  %476 = vmatprep.subr.bf16.mxu0 %v580_v1  ;;  %p547_p2 = scmp.ne.s32.totalorder %s324_s21, %s546_s22  ;;  %p552_p4 = scmp.lt.s32.totalorder %s546_s22, %s546_s22 }
  0x37   :  { %p553_p5 = por %p552_p4, %p551_p3 }
  0x38   :  { %457 = vmatpush3.bf16.msra.mxu1 %v456_v15  ;;  %478 = vmatpush3.bf16.msra.mxu0 %v477_v36 }
  0x39   :  { %458 = vmatprep.subr.bf16.mxu1 %v580_v1  ;;  %479 = vmatprep.subr.bf16.mxu0 %v580_v1  ;;  %p554_p6 = pnand %p553_p5, %p547_p2 }
  0x3c   :  { %460 = vmatpush3.bf16.msra.mxu1 %v459_v18  ;;  %481 = vmatpush3.bf16.msra.mxu0 %v480_v39 }
  0x3d   :  { %461 = vmatprep.subr.bf16.mxu1 %v580_v1  ;;  %482 = vmatprep.subr.bf16.mxu0 %v580_v1 }
  0x40   :  { %463 = vmatpush3.bf16.msra.mxu1 %v462_v21  ;;  %484 = vmatpush3.bf16.msra.mxu0 %v483_v42 }
  0x41   :  { %464 = vmatprep.subr.bf16.mxu1 %v580_v1  ;;  %485 = vmatprep.subr.bf16.mxu0 %v580_v1 }
  0x44   :  { %466 = vmatpush3.bf16.msra.mxu1 %v465_v24  ;;  %487 = vmatpush3.bf16.msra.mxu0 %v486_v45 }
  0x45   :  { %467 = vmatprep.subr.bf16.mxu1 %v580_v1  ;;  %488 = vmatprep.subr.bf16.mxu0 %v580_v1 }
  0x48   :  { %469 = vmatpush3.bf16.msra.mxu1 %v468_v27  ;;  %490 = vmatpush3.bf16.msra.mxu0 %v489_v48 }
  0x49   :  { %491 = vmatprep.subr.bf16.mxu0 %v580_v1 }
  0x4c   :  { %493 = vmatpush3.bf16.msra.mxu0 %v492_v60 }
  0xfd   :  { %v130_v54 = vpop.f32.mrb[0].mxu0 }
  0xfe   :  { %v131_v55 = vadd.f32 %v130_v54, %v55_v53  ;;  %v375_v56 = vpop.f32.mrb[1].mxu0 }
 0x100   :  { %v134_v57 = vmax.f32 %v131_v55, 0.0 }
 0x102   :  { %409 = vmatmul.mubr.f32.vlgmr.msra.gmra.mrb[0].mxu1 %v134_v57 }
 0x1d5   :  { %v221_v63 = vpop.f32.mrb[0].mxu1 }
 0x1d6   :  { %v222_v0 = vadd.f32 %v221_v63, %v154_v62  ;;  %v410_v1 = vpop.f32.mrb[1].mxu1 }
 0x1d8   :  { %v225_v2 = vmax.f32 %v222_v0, 0.0 }
 0x1da   :  { %444 = vmatmul.mubr.f32.vlgmr.msra.gmra.mrb[2].mxu0 %v225_v2 }
 0x2ad   :  { %v312_v5 = vpop.f32.mrb[2].mxu0 }
 0x2ae   :  { %v313_v6 = vadd.f32 %v312_v5, %v245_v4  ;;  %v445_v7 = vpop.f32.mrb[3].mxu0 }
 0x2b0   :  { %316 = vst [vmem:[#allocation7] sm:$0xff] %v313_v6 }
 0x2b1   :  { %557 = shalt.err (!%p554_p6)
}
 0x2b2   :  { %s558_s25 = scalar_lea.hbm %s681_s5, 128 }
 0x2b3   :  { %p559_p7 = scmp.ne.s32.totalorder %s681_s5, %s558_s25  ;;  %p562_p8 = scmp.lt.u32.totalorder %s558_s25, %s681_s5 }
 0x2b5   :  { %p564_p9 = pnand %p562_p8, %p559_p7 }
 0x2b7   :  { %567 = shalt.err (!%p564_p9)
}
 0x2b8   :  { %326 = dma.vmem_to_hbm [thread:$0]  %s324_s21, 128, %s681_s5, [#allocation4]  }
 0x2b9   :  { %572 = dma.done.wait [#allocation4], 128  }
 0x2ba   :  { %573 = vsyncadd [#allocation4], 4294967168 }
 0x2bb   :  { %330 = vsyncpa [#allocation3], 1 }
 0x2bc   :  { %331 = vsyncpa [#allocation6], 1 }
 0x2bd   :  { %332 = vsyncpa [#allocation4], 1 }

</bundles_post_ra>
